<compile_context>
chip_gen: v7x
topology: tpu7x:2x2x1
jax: 0.10.0
libtpu: 0.0.40
codegen_flags: <defaults>
</compile_context>

<pallas_src>
import jax
import jax.numpy as jnp
from jax.experimental import pallas as pl
from jax.experimental.pallas import tpu as pltpu


# Pad each half (mu / logvar) of the fused quant conv to a full 8-row sublane
# group so the in-kernel split lands on vreg-row boundaries (free: MXU idle).
CLAT_PAD = 8


def _make_kernel(cin, w, h_tile, clat):
    """Kernel closure for one (batch, row-tile) grid step, lane-dense (C, L)."""
    L = h_tile * w          # output lanes per tile (multiple of 128 or == H*W)

    def kernel(slab_ref, wc_ref, bc_ref, wq_ref, bq_ref, eps_ref, z_ref):
        # slab_ref: (1, Cin, (TH+2)*W + 2)  bf16 -- TH rows + 1 halo row above
        #           and below, zero-padded in H, flattened onto lanes, plus one
        #           leading and one trailing zero element so every 3x3 tap is a
        #           non-negative static lane slice.
        # wc_ref:   (Chid, 9*Cin)   bf16   3x3 conv weight (transposed)
        # bc_ref:   (Chid, 1)       f32
        # wq_ref:   (2*CLAT_PAD, Chid) bf16  fused [mu ; logvar] quant weight
        # bq_ref:   (2*CLAT_PAD, 1) f32
        # eps_ref:  (1, Clat, L)    bf16   reparameterization noise (native NCHW)
        # z_ref:    (1, Clat, L)    f32    output latent sample (native NCHW)
        slab = slab_ref[0].astype(jnp.float32)          # (Cin, Lp) in VMEM/vregs

        # Column index of each output lane (for the conv's W zero-padding).
        col = jax.lax.broadcasted_iota(jnp.int32, (1, L), 1) % w
        not_first_col = col != 0
        not_last_col = col != (w - 1)

        # In-kernel im2col: 9 shifted (and boundary-masked) views of the slab.
        taps = []
        for kh in range(3):
            for kw in range(3):
                start = kh * w + kw      # == (kh*W + (kw-1)) + 1 (leading zero)
                tap = slab[:, start:start + L]           # (Cin, L), static slice
                if kw == 0:              # reads column c-1 -> zero at c == 0
                    tap = jnp.where(not_first_col, tap, 0.0)
                elif kw == 2:            # reads column c+1 -> zero at c == W-1
                    tap = jnp.where(not_last_col, tap, 0.0)
                taps.append(tap)
        patches = jnp.concatenate(taps, axis=0).astype(jnp.bfloat16)  # (9Cin, L)

        # 3x3 conv (pad=1) as a single K=9*Cin bf16 matmul, f32 accumulation.
        h = jnp.dot(wc_ref[...], patches,
                    preferred_element_type=jnp.float32) + bc_ref[...]
        h = h * jax.nn.sigmoid(h)                        # SiLU, f32 VPU/EUP

        # Fused 1x1 quant convs -> [mu ; logvar], halves on 8-row boundaries.
        zq = jnp.dot(wq_ref[...], h.astype(jnp.bfloat16),
                     preferred_element_type=jnp.float32) + bq_ref[...]
        z_mu = zq[0:clat, :]
        z_lv = jnp.clip(zq[CLAT_PAD:CLAT_PAD + clat, :], -30.0, 20.0)
        z_sigma = jnp.exp(0.5 * z_lv)

        # Sampling: z = mu + sigma * eps  (f32 elementwise, lane-dense store).
        eps32 = eps_ref[0].astype(jnp.float32)
        z_ref[0] = (z_mu + z_sigma * eps32).astype(z_ref.dtype)

    return kernel


def _pick_h_tile(H, W, N, target_lanes=2048):
    """Pick a row-tile height TH: H % TH == 0, TH*W a multiple of 128 (or the
    whole image), lane width <= target, and N*(H/TH) >= 4 grid steps so both
    v7x TensorCores get >=2 pipelined steps when possible."""
    cands = [th for th in range(1, H + 1)
             if H % th == 0 and ((th * W) % 128 == 0 or th == H)]
    good = [th for th in cands if th * W <= target_lanes and N * (H // th) >= 4]
    if good:
        return max(good)
    good = [th for th in cands if th * W <= target_lanes]
    if good:
        return max(good)
    return min(cands)


def aekl_wrapper_forward(x_nchw, params, eps_nchw, h_tile=None):
    """Forward of AEKLWrapper.  x, eps in NCHW (PyTorch convention)."""
    wconv, bconv, wmu, bmu, wlv, blv = params
    N, Cin, H, W = x_nchw.shape
    Chid = wconv.shape[-1]
    Clat = wmu.shape[-1]
    assert Clat <= CLAT_PAD
    K = 9 * Cin
    HW = H * W

    if h_tile is None:
        h_tile = _pick_h_tile(H, W, N)
    TH = h_tile
    assert H % TH == 0, (H, TH)
    T = H // TH
    L = TH * W
    assert (L % 128 == 0) or (TH == H), (TH, W)
    Lp = (TH + 2) * W + 2

    compute_dtype = jnp.bfloat16

    # ---- ~1x HBM input prep (no 9x im2col tensor in HBM) --------------------
    x = x_nchw.astype(compute_dtype)
    # zero-pad only H; the conv's W padding is applied in-kernel by masking.
    xp = jnp.pad(x, ((0, 0), (0, 0), (1, 1), (0, 0)))        # (N, Cin, H+2, W)
    # Per-tile slabs: TH rows + 1 halo row above/below, flattened onto lanes,
    # plus 1 leading / trailing zero so all 9 taps are static lane slices.
    slabs = jnp.stack(
        [xp[:, :, t * TH: t * TH + TH + 2, :] for t in range(T)], axis=1)
    slabs = slabs.reshape(N * T, Cin, (TH + 2) * W)
    slabs = jnp.pad(slabs, ((0, 0), (0, 0), (1, 1)))          # (N*T, Cin, Lp)

    # eps consumed in native NCHW: reshape only, no transpose / extra HBM pass.
    eps = eps_nchw.astype(compute_dtype).reshape(N, Clat, HW)

    # ---- weights: transposed (out, in) layout; quant convs fused + padded ---
    wc = jnp.transpose(wconv.reshape(K, Chid)).astype(compute_dtype)  # (Chid,K)
    bc = bconv.reshape(Chid, 1).astype(jnp.float32)
    wq = jnp.zeros((2 * CLAT_PAD, Chid), jnp.float32)
    wq = wq.at[:Clat].set(wmu.T).at[CLAT_PAD:CLAT_PAD + Clat].set(wlv.T)
    wq = wq.astype(compute_dtype)                                     # (16,Chid)
    bq = jnp.zeros((2 * CLAT_PAD, 1), jnp.float32)
    bq = bq.at[:Clat, 0].set(bmu).at[CLAT_PAD:CLAT_PAD + Clat, 0].set(blv)

    kernel = _make_kernel(Cin, W, TH, Clat)

    def full(shape):
        return pl.BlockSpec(shape, lambda n, t: (0,) * len(shape))

    z_flat = pl.pallas_call(
        kernel,
        out_shape=jax.ShapeDtypeStruct((N, Clat, HW), jnp.float32),
        grid_spec=pltpu.PrefetchScalarGridSpec(
            num_scalar_prefetch=0,
            grid=(N, T),
            in_specs=[
                # per-(batch, row-tile) input slab, bf16
                pl.BlockSpec((1, Cin, Lp), lambda n, t: (n * T + t, 0, 0)),
                full((Chid, K)),
                full((Chid, 1)),
                full((2 * CLAT_PAD, Chid)),
                full((2 * CLAT_PAD, 1)),
                # eps tile in native NCHW order
                pl.BlockSpec((1, Clat, L), lambda n, t: (n, 0, t)),
            ],
            out_specs=pl.BlockSpec((1, Clat, L), lambda n, t: (n, 0, t)),
        ),
        compiler_params=pltpu.CompilerParams(
            dimension_semantics=("parallel", "parallel"),
            # explicit scoped-VMEM limit (>= v5e's 16 MiB default, safe on
            # v7x's 64 MiB physical VMEM); tiles here are far below it.
            vmem_limit_bytes=32 * 1024 * 1024,
        ),
    )(slabs, wc, bc, wq, bq, eps)

    # Kernel output is already contiguous NCHW; reshape is free.
    return z_flat.reshape(N, Clat, H, W)


def _reference_forward(x_nchw, params, eps_nchw, compute_dtype=jnp.bfloat16):
    """Plain-JAX reference.  Mirrors the kernel's operand rounding: inputs,
    weights, eps and the intermediate h are rounded to bf16; all accumulation
    and elementwise math stays f32."""
    wconv, bconv, wmu, bmu, wlv, blv = params

    def q(a):
        return a.astype(compute_dtype).astype(jnp.float32)

    x = jnp.transpose(q(x_nchw), (0, 2, 3, 1))
    eps = jnp.transpose(q(eps_nchw), (0, 2, 3, 1))
    h = jax.lax.conv_general_dilated(
        x, q(wconv), window_strides=(1, 1), padding=((1, 1), (1, 1)),
        dimension_numbers=("NHWC", "HWIO", "NHWC"),
        preferred_element_type=jnp.float32) + bconv
    h = h * jax.nn.sigmoid(h)
    hq = q(h)
    z_mu = jnp.einsum("nhwc,cd->nhwd", hq, q(wmu),
                      preferred_element_type=jnp.float32) + bmu
    z_lv = jnp.clip(
        jnp.einsum("nhwc,cd->nhwd", hq, q(wlv),
                   preferred_element_type=jnp.float32) + blv, -30.0, 20.0)
    z = z_mu + jnp.exp(0.5 * z_lv) * eps
    return jnp.transpose(z, (0, 3, 1, 2))


def _init_params(key, cin, chid, clat):
    k1, k2, k3, k4, k5, k6 = jax.random.split(key, 6)
    wconv = jax.random.normal(k1, (3, 3, cin, chid), jnp.float32) * 0.1
    bconv = jax.random.normal(k2, (chid,), jnp.float32) * 0.01
    wmu = jax.random.normal(k3, (chid, clat), jnp.float32) * 0.1
    bmu = jax.random.normal(k4, (clat,), jnp.float32) * 0.01
    wlv = jax.random.normal(k5, (chid, clat), jnp.float32) * 0.1
    blv = jax.random.normal(k6, (clat,), jnp.float32) * 0.01
    return (wconv, bconv, wmu, bmu, wlv, blv)


if __name__ == "__main__":
    N, Cin, H, W = 2, 4, 16, 16     # input x: NCHW, matches PyTorch convention
    Chid, Clat = 32, 4              # hidden width / latent channels

    root = jax.random.PRNGKey(0)
    kx, keps, kp = jax.random.split(root, 3)

    x = jax.random.normal(kx, (N, Cin, H, W), jnp.float32)
    # Reparameterization noise (eps ~ N(0,1)); passed in so the kernel matches
    # model.sampling() semantics exactly.
    eps = jax.random.normal(keps, (N, Clat, H, W), jnp.float32)
    params = _init_params(kp, Cin, Chid, Clat)

    z_ref = _reference_forward(x, params, eps)

    # default (auto-picked) row tiling -> grid (N, H/TH), both axes parallel
    z = jax.block_until_ready(aekl_wrapper_forward(x, params, eps))
    assert z.shape == (N, Clat, H, W), z.shape
    assert jnp.allclose(z, z_ref, rtol=2e-3, atol=2e-3), \
        float(jnp.max(jnp.abs(z - z_ref)))

    # also validate an explicit multi-tile mapping and the whole-image mapping
    for th in (8, H):
        z2 = jax.block_until_ready(
            aekl_wrapper_forward(x, params, eps, h_tile=th))
        assert jnp.allclose(z2, z_ref, rtol=2e-3, atol=2e-3), \
            (th, float(jnp.max(jnp.abs(z2 - z_ref))))

    print("KERNEL_OK")
</pallas_src>

<mosaic_0001>
module attributes {stable_mosaic.version = 11 : i64} {
  func.func @kernel(%arg0: i32, %arg1: i32, %arg2: memref<1x4x162xbf16, #tpu.memory_space<vmem>>, %arg3: memref<32x36xbf16, #tpu.memory_space<vmem>>, %arg4: memref<32x1xf32, #tpu.memory_space<vmem>>, %arg5: memref<16x32xbf16, #tpu.memory_space<vmem>>, %arg6: memref<16x1xf32, #tpu.memory_space<vmem>>, %arg7: memref<1x4x128xbf16, #tpu.memory_space<vmem>>, %arg8: memref<1x4x128xf32, #tpu.memory_space<vmem>>) attributes {dimension_semantics = [#tpu.dimension_semantics<parallel>, #tpu.dimension_semantics<parallel>], iteration_bounds = array<i64: 2, 2>, scalar_prefetch = 0 : i64, scratch_operands = 0 : i64, tpu.core_type = #tpu.core_type<tc>, window_params = [{transform_indices = @transform_0, window_bounds = array<i64: 1, 4, 162>}, {pipeline_mode = #tpu.pipeline_mode<synchronous>, transform_indices = @transform_1, window_bounds = array<i64: 32, 36>}, {pipeline_mode = #tpu.pipeline_mode<synchronous>, transform_indices = @transform_2, window_bounds = array<i64: 32, 1>}, {pipeline_mode = #tpu.pipeline_mode<synchronous>, transform_indices = @transform_3, window_bounds = array<i64: 16, 32>}, {pipeline_mode = #tpu.pipeline_mode<synchronous>, transform_indices = @transform_4, window_bounds = array<i64: 16, 1>}, {transform_indices = @transform_5, window_bounds = array<i64: 1, 4, 128>}, {transform_indices = @transform_6, window_bounds = array<i64: 1, 4, 128>}]} {
    %c0 = arith.constant 0 : index
    %c0_0 = arith.constant 0 : index
    %c0_1 = arith.constant 0 : index
    %0 = vector.load %arg2[%c0, %c0_0, %c0_1] : memref<1x4x162xbf16, #tpu.memory_space<vmem>>, vector<1x4x162xbf16>
    %1 = vector.shape_cast %0 : vector<1x4x162xbf16> to vector<4x162xbf16>
    %2 = arith.extf %1 : vector<4x162xbf16> to vector<4x162xf32>
    %3 = tpu.iota {dimensions = array<i32: 1>} : vector<1x128xi32>
    %c16_i32 = arith.constant 16 : i32
    %c0_i32 = arith.constant 0 : i32
    %4 = arith.cmpi eq, %c16_i32, %c0_i32 : i32
    %c1_i32 = arith.constant 1 : i32
    %5 = arith.select %4, %c1_i32, %c16_i32 : i32
    %6 = vector.broadcast %5 : i32 to vector<1x128xi32>
    %7 = arith.remsi %3, %6 : vector<1x128xi32>
    %c0_i32_2 = arith.constant 0 : i32
    %8 = vector.broadcast %c0_i32_2 : i32 to vector<1x128xi32>
    %9 = arith.cmpi ne, %7, %8 : vector<1x128xi32>
    %c0_i32_3 = arith.constant 0 : i32
    %10 = vector.broadcast %c0_i32_3 : i32 to vector<1x128xi32>
    %11 = arith.cmpi slt, %7, %10 : vector<1x128xi32>
    %c0_i32_4 = arith.constant 0 : i32
    %12 = arith.cmpi slt, %5, %c0_i32_4 : i32
    %13 = vector.broadcast %12 : i1 to vector<1x128xi1>
    %14 = vector.broadcast %13 : vector<1x128xi1> to vector<1x128xi1>
    %15 = arith.xori %11, %14 : vector<1x128xi1>
    %16 = arith.andi %15, %9 : vector<1x128xi1>
    %17 = vector.broadcast %5 : i32 to vector<1x128xi32>
    %18 = arith.addi %7, %17 : vector<1x128xi32>
    %19 = arith.select %16, %18, %7 : vector<1x128xi1>, vector<1x128xi32>
    %c0_i32_5 = arith.constant 0 : i32
    %20 = vector.broadcast %c0_i32_5 : i32 to vector<1x128xi32>
    %21 = arith.cmpi ne, %19, %20 : vector<1x128xi32>
    %c15_i32 = arith.constant 15 : i32
    %22 = vector.broadcast %c15_i32 : i32 to vector<1x128xi32>
    %23 = arith.cmpi ne, %19, %22 : vector<1x128xi32>
    %24 = vector.extract_strided_slice %2 {offsets = [0, 0], sizes = [4, 128], strides = [1, 1]} : vector<4x162xf32> to vector<4x128xf32>
    %cst = arith.constant 0.000000e+00 : f32
    %25 = vector.shape_cast %21 : vector<1x128xi1> to vector<1x128xi1>
    %26 = vector.broadcast %25 : vector<1x128xi1> to vector<4x128xi1>
    %27 = vector.broadcast %cst : f32 to vector<4x128xf32>
    %28 = arith.select %26, %24, %27 : vector<4x128xi1>, vector<4x128xf32>
    %29 = vector.extract_strided_slice %2 {offsets = [0, 1], sizes = [4, 128], strides = [1, 1]} : vector<4x162xf32> to vector<4x128xf32>
    %30 = vector.extract_strided_slice %2 {offsets = [0, 2], sizes = [4, 128], strides = [1, 1]} : vector<4x162xf32> to vector<4x128xf32>
    %cst_6 = arith.constant 0.000000e+00 : f32
    %31 = vector.shape_cast %23 : vector<1x128xi1> to vector<1x128xi1>
    %32 = vector.broadcast %31 : vector<1x128xi1> to vector<4x128xi1>
    %33 = vector.broadcast %cst_6 : f32 to vector<4x128xf32>
    %34 = arith.select %32, %30, %33 : vector<4x128xi1>, vector<4x128xf32>
    %35 = vector.extract_strided_slice %2 {offsets = [0, 16], sizes = [4, 128], strides = [1, 1]} : vector<4x162xf32> to vector<4x128xf32>
    %cst_7 = arith.constant 0.000000e+00 : f32
    %36 = vector.shape_cast %21 : vector<1x128xi1> to vector<1x128xi1>
    %37 = vector.broadcast %36 : vector<1x128xi1> to vector<4x128xi1>
    %38 = vector.broadcast %cst_7 : f32 to vector<4x128xf32>
    %39 = arith.select %37, %35, %38 : vector<4x128xi1>, vector<4x128xf32>
    %40 = vector.extract_strided_slice %2 {offsets = [0, 17], sizes = [4, 128], strides = [1, 1]} : vector<4x162xf32> to vector<4x128xf32>
    %41 = vector.extract_strided_slice %2 {offsets = [0, 18], sizes = [4, 128], strides = [1, 1]} : vector<4x162xf32> to vector<4x128xf32>
    %cst_8 = arith.constant 0.000000e+00 : f32
    %42 = vector.shape_cast %23 : vector<1x128xi1> to vector<1x128xi1>
    %43 = vector.broadcast %42 : vector<1x128xi1> to vector<4x128xi1>
    %44 = vector.broadcast %cst_8 : f32 to vector<4x128xf32>
    %45 = arith.select %43, %41, %44 : vector<4x128xi1>, vector<4x128xf32>
    %46 = vector.extract_strided_slice %2 {offsets = [0, 32], sizes = [4, 128], strides = [1, 1]} : vector<4x162xf32> to vector<4x128xf32>
    %cst_9 = arith.constant 0.000000e+00 : f32
    %47 = vector.shape_cast %21 : vector<1x128xi1> to vector<1x128xi1>
    %48 = vector.broadcast %47 : vector<1x128xi1> to vector<4x128xi1>
    %49 = vector.broadcast %cst_9 : f32 to vector<4x128xf32>
    %50 = arith.select %48, %46, %49 : vector<4x128xi1>, vector<4x128xf32>
    %51 = vector.extract_strided_slice %2 {offsets = [0, 33], sizes = [4, 128], strides = [1, 1]} : vector<4x162xf32> to vector<4x128xf32>
    %52 = vector.extract_strided_slice %2 {offsets = [0, 34], sizes = [4, 128], strides = [1, 1]} : vector<4x162xf32> to vector<4x128xf32>
    %cst_10 = arith.constant 0.000000e+00 : f32
    %53 = vector.shape_cast %23 : vector<1x128xi1> to vector<1x128xi1>
    %54 = vector.broadcast %53 : vector<1x128xi1> to vector<4x128xi1>
    %55 = vector.broadcast %cst_10 : f32 to vector<4x128xf32>
    %56 = arith.select %54, %52, %55 : vector<4x128xi1>, vector<4x128xf32>
    %57 = tpu.concatenate %28, %29, %34, %39, %40, %45, %50, %51, %56 in 0 : vector<4x128xf32>, vector<4x128xf32>, vector<4x128xf32>, vector<4x128xf32>, vector<4x128xf32>, vector<4x128xf32>, vector<4x128xf32>, vector<4x128xf32>, vector<4x128xf32> -> vector<36x128xf32>
    %58 = arith.truncf %57 : vector<36x128xf32> to vector<36x128xbf16>
    %c0_11 = arith.constant 0 : index
    %c0_12 = arith.constant 0 : index
    %59 = vector.load %arg3[%c0_11, %c0_12] : memref<32x36xbf16, #tpu.memory_space<vmem>>, vector<32x36xbf16>
    %cst_13 = arith.constant dense<0.000000e+00> : vector<32x128xf32>
    %60 = tpu.matmul %59, %58, %cst_13 {dimension_numbers = #tpu.dot_dimension_numbers<[1], [0], [0], [1], [0, 0, 1, 1], [], []>} : vector<32x36xbf16>, vector<36x128xbf16>, vector<32x128xf32> -> vector<32x128xf32>
    %c0_14 = arith.constant 0 : index
    %c0_15 = arith.constant 0 : index
    %61 = vector.load %arg4[%c0_14, %c0_15] : memref<32x1xf32, #tpu.memory_space<vmem>>, vector<32x1xf32>
    %62 = vector.broadcast %61 : vector<32x1xf32> to vector<32x128xf32>
    %63 = arith.addf %60, %62 : vector<32x128xf32>
    %64 = arith.negf %63 : vector<32x128xf32>
    %65 = math.exp %64 : vector<32x128xf32>
    %cst_16 = arith.constant 1.000000e+00 : f32
    %66 = vector.broadcast %cst_16 : f32 to vector<32x128xf32>
    %67 = arith.addf %66, %65 : vector<32x128xf32>
    %68 = arith.divf %66, %67 : vector<32x128xf32>
    %69 = arith.mulf %63, %68 : vector<32x128xf32>
    %c0_17 = arith.constant 0 : index
    %c0_18 = arith.constant 0 : index
    %70 = vector.load %arg5[%c0_17, %c0_18] : memref<16x32xbf16, #tpu.memory_space<vmem>>, vector<16x32xbf16>
    %71 = arith.truncf %69 : vector<32x128xf32> to vector<32x128xbf16>
    %cst_19 = arith.constant dense<0.000000e+00> : vector<16x128xf32>
    %72 = tpu.matmul %70, %71, %cst_19 {dimension_numbers = #tpu.dot_dimension_numbers<[1], [0], [0], [1], [0, 0, 1, 1], [], []>} : vector<16x32xbf16>, vector<32x128xbf16>, vector<16x128xf32> -> vector<16x128xf32>
    %c0_20 = arith.constant 0 : index
    %c0_21 = arith.constant 0 : index
    %73 = vector.load %arg6[%c0_20, %c0_21] : memref<16x1xf32, #tpu.memory_space<vmem>>, vector<16x1xf32>
    %74 = vector.broadcast %73 : vector<16x1xf32> to vector<16x128xf32>
    %75 = arith.addf %72, %74 : vector<16x128xf32>
    %76 = vector.extract_strided_slice %75 {offsets = [0, 0], sizes = [4, 128], strides = [1, 1]} : vector<16x128xf32> to vector<4x128xf32>
    %77 = vector.extract_strided_slice %75 {offsets = [8, 0], sizes = [4, 128], strides = [1, 1]} : vector<16x128xf32> to vector<4x128xf32>
    %cst_22 = arith.constant -3.000000e+01 : f32
    %cst_23 = arith.constant 2.000000e+01 : f32
    %78 = vector.broadcast %cst_22 : f32 to vector<4x128xf32>
    %79 = arith.maximumf %78, %77 : vector<4x128xf32>
    %80 = vector.broadcast %cst_23 : f32 to vector<4x128xf32>
    %81 = arith.minimumf %80, %79 : vector<4x128xf32>
    %cst_24 = arith.constant 5.000000e-01 : f32
    %82 = vector.broadcast %cst_24 : f32 to vector<4x128xf32>
    %83 = arith.mulf %82, %81 : vector<4x128xf32>
    %84 = math.exp %83 : vector<4x128xf32>
    %c0_25 = arith.constant 0 : index
    %c0_26 = arith.constant 0 : index
    %c0_27 = arith.constant 0 : index
    %85 = vector.load %arg7[%c0_25, %c0_26, %c0_27] : memref<1x4x128xbf16, #tpu.memory_space<vmem>>, vector<1x4x128xbf16>
    %86 = vector.shape_cast %85 : vector<1x4x128xbf16> to vector<4x128xbf16>
    %87 = arith.extf %86 : vector<4x128xbf16> to vector<4x128xf32>
    %88 = arith.mulf %84, %87 : vector<4x128xf32>
    %89 = arith.addf %76, %88 : vector<4x128xf32>
    %c0_28 = arith.constant 0 : index
    %c0_29 = arith.constant 0 : index
    %c0_30 = arith.constant 0 : index
    %90 = vector.load %arg8[%c0_28, %c0_29, %c0_30] : memref<1x4x128xf32, #tpu.memory_space<vmem>>, vector<1x4x128xf32>
    %91 = vector.shape_cast %90 : vector<1x4x128xf32> to vector<4x128xf32>
    %92 = vector.shape_cast %89 : vector<4x128xf32> to vector<1x4x128xf32>
    tpu.vector_store %arg8[%c0_28, %c0_29, %c0_30], %92 {strides = array<i32>} : memref<1x4x128xf32, #tpu.memory_space<vmem>>, vector<1x4x128xf32>,
    return
  }
  func.func @transform_0(%arg0: i32, %arg1: i32) -> (i32, i32, i32) {
    %c2_i32 = arith.constant 2 : i32
    %0 = arith.muli %arg0, %c2_i32 : i32
    %1 = arith.addi %0, %arg1 : i32
    %c0_i32 = arith.constant 0 : i32
    %c0_i32_0 = arith.constant 0 : i32
    %c0_i32_1 = arith.constant 0 : i32
    return %1, %c0_i32, %c0_i32_0 : i32, i32, i32
  }
  func.func @transform_1(%arg0: i32, %arg1: i32) -> (i32, i32) {
    %c0_i32 = arith.constant 0 : i32
    %c0_i32_0 = arith.constant 0 : i32
    %c0_i32_1 = arith.constant 0 : i32
    return %c0_i32, %c0_i32_0 : i32, i32
  }
  func.func @transform_2(%arg0: i32, %arg1: i32) -> (i32, i32) {
    %c0_i32 = arith.constant 0 : i32
    %c0_i32_0 = arith.constant 0 : i32
    %c0_i32_1 = arith.constant 0 : i32
    return %c0_i32, %c0_i32_0 : i32, i32
  }
  func.func @transform_3(%arg0: i32, %arg1: i32) -> (i32, i32) {
    %c0_i32 = arith.constant 0 : i32
    %c0_i32_0 = arith.constant 0 : i32
    %c0_i32_1 = arith.constant 0 : i32
    return %c0_i32, %c0_i32_0 : i32, i32
  }
  func.func @transform_4(%arg0: i32, %arg1: i32) -> (i32, i32) {
    %c0_i32 = arith.constant 0 : i32
    %c0_i32_0 = arith.constant 0 : i32
    %c0_i32_1 = arith.constant 0 : i32
    return %c0_i32, %c0_i32_0 : i32, i32
  }
  func.func @transform_5(%arg0: i32, %arg1: i32) -> (i32, i32, i32) {
    %c0_i32 = arith.constant 0 : i32
    %c0_i32_0 = arith.constant 0 : i32
    return %arg0, %c0_i32, %arg1 : i32, i32, i32
  }
  func.func @transform_6(%arg0: i32, %arg1: i32) -> (i32, i32, i32) {
    %c0_i32 = arith.constant 0 : i32
    %c0_i32_0 = arith.constant 0 : i32
    return %arg0, %c0_i32, %arg1 : i32, i32, i32
  }
}

</mosaic_0001>

<bundles_post_ra>
// kernel: tpu_custom_call.1
= control target key start
LH: loop header
LB: loop body
LE: loop exit
PB: predicated region body
PF: predicated region fallthrough
CT: control target
= control target key end

     0   :  { %11 = vsyncpa [#allocation3], 0  ;;  %s1271_s0 = inlined_call_operand.vmem [shape: bf16[4,4,162], index: 0, kind: input, shape index: {}]   ;;  %s1272_s1 = inlined_call_operand.vmem [shape: bf16[32,36], index: 1, kind: input, shape index: {}]   ;;  %s1273_s2 = inlined_call_operand.vmem [shape: f32[32,1], index: 2, kind: input, shape index: {}]   ;;  %s1274_s3 = inlined_call_operand.vmem [shape: bf16[16,32], index: 3, kind: input, shape index: {}]   ;;  %s1275_s4 = inlined_call_operand.vmem [shape: f32[16,1], index: 4, kind: input, shape index: {}]   ;;  %s1276_s5 = inlined_call_operand.vmem [shape: bf16[2,4,256], index: 5, kind: input, shape index: {}]   ;;  %s1277_s6 = inlined_call_operand.hbm [shape: f32[2,4,256], index: 6, kind: output, shape index: {}]  }
   0x1   :  { %13 = vsyncpa [#allocation3 + $0x1], 0  ;;  %s1063_s21 = smov 0   ;;  %s1065_s22 = smov 0  }
   0x2   :  { %s1067_s23 = smov 0   ;;  %s1069_s24 = smov 0  }
   0x3   :  { %s1071_s25 = smov 0   ;;  %s1073_s26 = smov 0  }
   0x4   :  { %s1075_s27 = smov 0   ;;  %s1077_s28 = smov 0  }
   0x5 LB: > { %s719_s29 = sadd.s32 4294967295, %s1014_s28   ;;  %s720_s30 = sadd.s32 4294967294, %s1014_s28   ;;  %s1014_s28 = sphi %s1077_s28, %s19_s28   ;;  %s1010_s27 = sphi %s1075_s27, %s1290_s27   ;;  %s1006_s26 = sphi %s1073_s26, %s1289_s26   ;;  %s1002_s25 = sphi %s1071_s25, %s1288_s25   ;;  %s998_s24 = sphi %s1069_s24, %s1287_s24   ;;  %s994_s23 = sphi %s1067_s23, %s1286_s23   ;;  %s990_s22 = sphi %s1065_s22, %s1285_s22   ;;  %s986_s21 = sphi %s1063_s21, %s1284_s21  }
   0x6   : > { %s28_s7 = sadd.s32 1, %s1006_s26  ;;  %s31_s8 = sadd.s32 1, %s1010_s27 }
   0x7   : > { %p29_p0 = scmp.ge.s32.totalorder %s28_s7, 2  ;;  %p192_p1 = scmp.ne.s32.totalorder %s994_s23, %s990_s22 }
   0x8   : > { %p193_p2 = scmp.eq.s32.totalorder %s719_s29, 3  ;;  %p198_p5 = scmp.ne.s32.totalorder %s990_s22, %s986_s21 }
   0x9   : > { %s1292_s7 = smov (%p29_p0, %s28_s7), 0  ;;  %s1294_s8 = smov (!%p29_p0, %s31_s8), %s1010_s27 }
   0xa   : > { %s178_s9 = ssub.s32 %s1006_s26, %s1292_s7  ;;  %p1114_p3 = por %p193_p2, %p192_p1 }
   0xb   : > { %p33_p4 = scmp.ge.s32.totalorder %s1294_s8, 2  ;;  %p199_p6 = scmp.eq.s32.totalorder %s720_s30, 3 }
   0xc   : > { %p725_p7 = scmp.ge.s32.totalorder %s1014_s28, 1  ;;  %p252_p9 = scmp.lt.s32.totalorder %s1014_s28, 5 }
   0xd   : > { %s1296_s8 = smov (%p33_p4, %s1294_s8), 0  ;;  %p1123_p8 = por %p199_p6, %p198_p5 }
   0xe   : > { %s177_s12 = ssub.s32 %s1010_s27, %s1296_s8  ;;  %s182_s13 = sadd.s32 1, %s994_s23 }
   0xf   : > { %s179_s14 = sor.u32 %s178_s9, %s177_s12  ;;  %p253_p10 = pnand %p725_p7, %p252_p9 }
  0x10   : > { %p180_p11 = scmp.eq.s32.totalorder %s179_s14, 0  ;;  %s727_s16 = sshll.u32 (!%p253_p10), %s1002_s25, 1  ;;  %v899_v6 = vld [vmem:[%s1272_s1] sm:$0xff] (!%p253_p10)   ;;  %vm449_vm0 = vcmask (!%p253_p10), 293888   ;;  %v416_v7 = vld [vmem:[%s1273_s2 + $0x8] sm:$0xff] (!%p253_p10)  ;;  %v1024_v9 = vmov (!%p253_p10), 0   ;;  %v312_v14 = vlaneseq (!%p253_p10) }
  0x11   : > { %256 = sbr.rel (%p253_p10) target bundleno = 683 (0x2ab), region = 44  ;;  %s1136_s17 = sadd.s32 (!%p253_p10), %s998_s24, %s727_s16  ;;  %762 = vmatprep.mubr.msk.bf16.mxu0 (!%p253_p10), %vm449_vm0, %v899_v6  ;;  %v415_v8 = vld [vmem:[%s1273_s2] sm:$0xff] (!%p253_p10)  ;;  %898 = vset.pattern.permute.xlu1 (!%p253_p10), %v1024_v9  ;;  %v417_v10 = vld [vmem:[%s1273_s2 + $0x10] sm:$0xff] (!%p253_p10)  ;;  %v418_v11 = vld [vmem:[%s1273_s2 + $0x18] sm:$0xff] (!%p253_p10)  ;;  %vm347_vm1 = vcmask (!%p253_p10), 916480   ;;  %vm380_vm3 = vcmask (!%p253_p10), 1039360  }
  0x12   : > { %s1132_s15 = scalar_select %p180_p11, %s994_s23, %s182_s13  }
  0x13   : > { %p294_p12 = scmp.lt.s32.totalorder (!%p253_p10), %s1136_s17, 3  ;;  %s1016_s9 = smov (!%p253_p10), 112   ;;  %897 = vset.pattern.permute.xlu0 (!%p253_p10), %v1024_v9  ;;  %v542_v12 = vld [vmem:[%s1275_s4 + $0x8] sm:$0xff] (!%p253_p10)  ;;  %v541_v13 = vld [vmem:[%s1275_s4] sm:$0xff] (!%p253_p10)  ;;  %v313_v15 = vand.u32 (!%p253_p10), 127, %v312_v14  ;;  %vm355_vm4 = vcmask (!%p253_p10), 900096  }
  0x14   : > { %s1017_s12 = smov (!%p253_p10), 127   ;;  %s1018_s13 = smov (!%p253_p10), 126   ;;  %vm339_vm6 = vcmask (!%p253_p10), 1031168   ;;  %vm403_vm7 = vcmask (!%p253_p10), 1043456   ;;  %vm363_vm8 = vcmask (!%p253_p10), 785408   ;;  %vm390_vm9 = vcmask (!%p253_p10), 908288  }
  0x15   : > { %s1019_s14 = smov (!%p253_p10), 110   ;;  %s1020_s16 = smov (!%p253_p10), 96   ;;  %v318_v16 = vand.u32 (!%p253_p10), 15, %v313_v15  ;;  %vm400_vm10 = vcmask (!%p253_p10), 777216   ;;  %vm371_vm11 = vcmask (!%p253_p10), 769024   ;;  %vm456_vm12 = vcmask (!%p253_p10), 1041408  }
  0x16   : > { %s1022_s29 = smov (!%p253_p10), 95   ;;  %vm1026_vm13 = vmmov (!%p253_p10), 0   ;;  %vm558_vm14 = vcmask (!%p253_p10), 261120   ;;  %p301_p13 = scmp.lt.s32.totalorder (!%p253_p10), %s1002_s25, 1 }
  0x17   : > { %vm1173_vm2 = vcmp.ne.s32.totalorder (!%p253_p10), %v318_v16, 0  ;;  %vm1177_vm5 = vcmp.ne.s32.totalorder (!%p253_p10), %v318_v16, 15  ;;  %p303_p0 = scmp.lt.s32.totalorder (!%p253_p10), %s998_s24, 1 }
  0x18   : > { %s295_s18 = scalar_select %p294_p12, %s1136_s17, 3 }
  0x19   : > { %s1298_s25 = smov (!%p301_p13, %s1002_s25), 1  ;;  %s1300_s24 = smov (!%p303_p0, %s998_s24), 1 }
  0x1a   : > { %s747_s19 = sshll.u32 %s295_s18, 2  ;;  %s1021_s18 = smov 111  }
  0x1b   : > { %s298_s30 = scalar_lea.vmem %s1271_s0, %s747_s19  ;;  %s730_s19 = sshll.u32 %s1298_s25, 1 }
  0x1c   : > { %v310_v0 = vld [vmem:[%s298_s30] sm:$0xf]  ;;  %s1023_s30 = smov 94   ;;  %s306_s20 = sadd.s32 %s730_s19, %s1300_s24 }
  0x1d   : > { %v1143_v1 = vunpack.c.l.bf16 %v310_v0 }
  0x1f   : > { %v334_v2 = vcombine.high %v1143_v1, %v1143_v1  ;;  %v375_v3 = vcombine.low %v1143_v1, %v1143_v1  ;;  %v330_v28 = vsel %vm1173_vm2, %v1143_v1, 0.0 }
  0x21   : > { %v857_v4 = vpack.i.bf16 %v334_v2, %v1143_v1  ;;  %v867_v5 = vpack.i.bf16 %v1143_v1, %v375_v3  ;;  %v900_v3 = vld [vmem:[%s1272_s1 + $0x8] sm:$0xff]  }
  0x23   : > { %858 = vrot.lane.b32.xlu0 %v857_v4, %s1016_s9  ;;  %868 = vrot.lane.b32.xlu1 %v867_v5, %s1017_s12 }
  0x27   : > { %863 = vrot.lane.b32.xlu0 %v857_v4, %s1018_s13  ;;  %873 = vrot.lane.b32.xlu1 %v857_v4, %s1019_s14 }
  0x2b   : > { %878 = vrot.lane.b32.xlu0 %v857_v4, %s1020_s16  ;;  %883 = vrot.lane.b32.xlu1 %v857_v4, %s1021_s18  ;;  %s744_s16 = sshll.u32 %s1136_s17, 6  ;;  %s1027_s17 = smov [#allocation2]  }
  0x2c   : > { %s924_s12 = sshll.u32 %s1027_s17, 4  ;;  %s925_s12 = int_to_ptr.vmem [resolvable:$false] %s924_s12 }
  0x2f   : > { %888 = vrot.lane.b32.xlu0 %v867_v5, %s1022_s29  ;;  %893 = vrot.lane.b32.xlu1 %v857_v4, %s1023_s30  ;;  %v1025_v4 = vmov 0.0   ;;  %s731_s29 = sshll.u32 %s306_s20, 1  ;;  %s289_s30 = sand.u32 1, %s990_s22  }
  0x30   : > { %766 = vmatprep.subr.bf16.mxu1 %v1025_v4  ;;  %770 = vmatprep.mubr.msk.bf16.mxu1 %vm1026_vm13, %v1025_v4  ;;  %s308_s13 = scalar_lea.vmem %s1276_s5, %s731_s29  ;;  %s726_s14 = sshll.u32 %s289_s30, 2 }
  0x31   : > { %s291_s18 = scalar_lea.vmem [#allocation2], %s726_s14  ;;  %s1218_s20 = scalar_lea.hbm %s1277_s6, %s744_s16 }
  0x32   : > { %s629_s25 = sshll.u32 %s291_s18, 4  ;;  %s614_s29 = scalar_lea.sflag [#allocation3], %s289_s30  ;;  %s1220_s25 = int_to_ptr.vmem [resolvable:$true] %s629_s25 }
  0x33   : > { %426 = vperm.xlu1 %898, %v416_v7   ;;  %421 = vperm.xlu0 %897, %v415_v8   ;;  %s920_s9 = scalar_lea.vmem %s1220_s25, 64  ;;  %p927_p5 = scmp.lt.s32.totalorder %s1220_s25, %s925_s12 }
  0x34   : > { %p921_p1 = scmp.ne.s32.totalorder %s1220_s25, %s920_s9 }
  0x36   : > { %p922_p2 = pnand %p921_p1, %p1114_p3 }
  0x37   : > { %431 = vperm.xlu1 %898, %v417_v10   ;;  %436 = vperm.xlu0 %897, %v418_v11  }
  0x38   : > { %p923_p4 = pneg %p922_p2 }
  0x3b   : > { %550 = vperm.xlu1 %898, %v542_v12   ;;  %545 = vperm.xlu0 %897, %v541_v13  }
  0x95   : > { %v859_v17 = vpop.permute.xlu0 %858  ;;  %v869_v18 = vpop.permute.xlu1 %868 }
  0x96   : > { %v861_v20 = vunpack.i.h.bf16 %v859_v17  ;;  %v860_v21 = vunpack.i.l.bf16 %v859_v17  ;;  %v871_v22 = vunpack.i.h.bf16 %v869_v18  ;;  %v870_v23 = vunpack.i.l.bf16 %v869_v18 }
  0x98   : > { %v348_v24 = vsel %vm347_vm1, %v860_v21, %v861_v20  ;;  %v381_v30 = vsel %vm380_vm3, %v870_v23, %v871_v22 }
  0x99   : > { %v864_v26 = vpop.permute.xlu0 %863  ;;  %v874_v27 = vpop.permute.xlu1 %873  ;;  %v350_v29 = vsel %vm1173_vm2, %v348_v24, 0.0  ;;  %v404_v42 = vsel %vm403_vm7, %v330_v28, %v381_v30 }
  0x9a   : > { %v866_v31 = vunpack.i.h.bf16 %v864_v26  ;;  %v865_v32 = vunpack.i.l.bf16 %v864_v26  ;;  %v876_v33 = vunpack.i.h.bf16 %v874_v27  ;;  %v875_v34 = vunpack.i.l.bf16 %v874_v27 }
  0x9b   : > { %v384_v41 = vrot.slane %v350_v29, 4 }
  0x9c   : > { %v356_v35 = vsel %vm355_vm4, %v875_v34, %v876_v33  ;;  %v340_v36 = vsel %vm339_vm6, %v865_v32, %v866_v31 }
  0x9d   : > { %v879_v37 = vpop.permute.xlu0 %878  ;;  %v884_v38 = vpop.permute.xlu1 %883  ;;  %v342_v39 = vsel %vm1177_vm5, %v340_v36, 0.0  ;;  %v358_v40 = vsel %vm1177_vm5, %v356_v35, 0.0 }
  0x9e   : > { %v881_v43 = vunpack.i.h.bf16 %v879_v37  ;;  %v880_v44 = vunpack.i.l.bf16 %v879_v37  ;;  %v886_v45 = vunpack.i.h.bf16 %v884_v38  ;;  %v885_v46 = vunpack.i.l.bf16 %v884_v38 }
  0x9f   : > { %v405_v47 = vsel %vm403_vm7, %v342_v39, %v384_v41  ;;  %v394_v48 = vrot.slane %v358_v40, 4  ;;  %v901_v39 = vld [vmem:[%s1274_s3] sm:$0xff]  }
  0xa0   : > { %v391_v49 = vsel %vm390_vm9, %v885_v46, %v886_v45  ;;  %v408_v50 = vpack.c.bf16 %v405_v47, %v404_v42  ;;  %v364_v51 = vsel %vm363_vm8, %v880_v44, %v881_v43 }
  0xa1   : > { %v889_v52 = vpop.permute.xlu0 %888  ;;  %v894_v53 = vpop.permute.xlu1 %893  ;;  %v406_v58 = vsel %vm403_vm7, %v391_v49, %v394_v48  ;;  %v366_v61 = vsel %vm1173_vm2, %v364_v51, 0.0 }
  0xa2   : > { %v891_v54 = vunpack.i.h.bf16 %v889_v52  ;;  %v890_v55 = vunpack.i.l.bf16 %v889_v52  ;;  %756 = vmatprep.subr.bf16.mxu0 %v408_v50  ;;  %v896_v56 = vunpack.i.h.bf16 %v894_v53  ;;  %v895_v57 = vunpack.i.l.bf16 %v894_v53 }
  0xa3   : > { %757 = vmatpush3.bf16.msra.mxu0 %v408_v50  ;;  %v608_v50 = vld [vmem:[%s308_s13] sm:$0x3]  ;;  %s926_s13 = scalar_lea.vmem %s925_s12, 128 }
  0xa4   : > { %v401_v59 = vsel %vm400_vm10, %v890_v55, %v891_v54  ;;  %v372_v60 = vsel %vm371_vm11, %v895_v57, %v896_v56  ;;  %v609_v51 = vunpack.c.l.bf16 %v608_v50  ;;  %p928_p6 = scmp.lt.s32.totalorder %s926_s13, %s920_s9 }
  0xa5   : > { %v374_v62 = vsel %vm1177_vm5, %v372_v60, 0.0  ;;  %v407_v63 = vsel %vm403_vm7, %v366_v61, %v401_v59 }
  0xa6   : > { %v409_v0 = vpack.c.bf16 %v407_v63, %v406_v58  ;;  %v410_v1 = vpack.c.bf16 %v374_v62, %v374_v62  ;;  %p929_p7 = por %p928_p6, %p927_p5 }
  0xa8   : > { %758 = vmatprep.subr.bf16.mxu0 %v409_v0  ;;  %v458_v2 = vsel %vm456_vm12, %v410_v1, 0  ;;  %p930_p9 = pnand %p929_p7, %p923_p4 }
  0xa9   : > { %759 = vmatpush3.bf16.msra.mxu0 %v409_v0 }
  0xaa   : > { %774 = vmatprep.subr.msk.bf16.mxu0 %vm456_vm12, %v410_v1 }
  0xad   : > { %761 = vmatpush3.bf16.msra.mxu0 %v458_v2 }
  0xb0   : > { %763 = vmatmul.mubr.msk.bf16.vlgmr.msra.gmra.mrb[0].mxu0 %vm449_vm0, %v900_v3 }
  0xb2   : > { %v427_v5 = vpop.permute.xlu1 %426  ;;  %v422_v6 = vpop.permute.xlu0 %421 }
  0xb6   : > { %v432_v7 = vpop.permute.xlu1 %431  ;;  %v437_v11 = vpop.permute.xlu0 %436 }
  0xba   : > { %v551_v42 = vpop.permute.xlu1 %550  ;;  %v546_v53 = vpop.permute.xlu0 %545 }
 0x183   : > { %v764_v8 = vpop.f32.mrb[0].mxu0 }
 0x184   : > { %v503_v9 = vadd.f32 %v764_v8, %v432_v7  ;;  %v494_v10 = vpop.f32.mrb[1].mxu0 }
 0x185   : > { %v495_v12 = vadd.f32 %v494_v10, %v422_v6  ;;  %v765_v13 = vpop.f32.mrb[2].mxu0 }
 0x186   : > { %v738_v14 = vmul.f32 -1.442695, %v503_v9  ;;  %v506_v15 = vadd.f32 %v765_v13, %v437_v11  ;;  %v497_v16 = vpop.f32.mrb[3].mxu0 }
 0x187   : > { %v736_v17 = vmul.f32 -1.442695, %v495_v12  ;;  %v498_v18 = vadd.f32 %v497_v16, %v427_v5 }
 0x188   : > { %902 = vpow2.f32 %v738_v14  ;;  %v739_v19 = vmul.f32 -1.442695, %v506_v15 }
 0x189   : > { %904 = vpow2.f32 %v736_v17  ;;  %v737_v20 = vmul.f32 -1.442695, %v498_v18 }
 0x18a   : > { %906 = vpow2.f32 %v739_v19 }
 0x18b   : > { %908 = vpow2.f32 %v737_v20 }
 0x192   : > { %v903_v21 = vpop.eup %902 }
 0x193   : > { %v905_v22 = vpop.eup %904  ;;  %v523_v23 = vadd.f32 1.0, %v903_v21 }
 0x194   : > { %v907_v24 = vpop.eup %906  ;;  %v521_v25 = vadd.f32 1.0, %v905_v22 }
 0x195   : > { %v909_v26 = vpop.eup %908  ;;  %910 = vrcp.f32 %v523_v23  ;;  %v524_v27 = vadd.f32 1.0, %v907_v24 }
 0x196   : > { %912 = vrcp.f32 %v521_v25  ;;  %v522_v28 = vadd.f32 1.0, %v909_v26 }
 0x197   : > { %914 = vrcp.f32 %v524_v27 }
 0x198   : > { %916 = vrcp.f32 %v522_v28 }
 0x19f   : > { %v911_v29 = vpop.eup %910 }
 0x1a0   : > { %v913_v30 = vpop.eup %912  ;;  %v535_v33 = vmul.f32 %v911_v29, %v503_v9 }
 0x1a1   : > { %v915_v31 = vpop.eup %914  ;;  %v533_v35 = vmul.f32 %v913_v30, %v495_v12 }
 0x1a2   : > { %v917_v32 = vpop.eup %916  ;;  %v536_v34 = vmul.f32 %v915_v31, %v506_v15 }
 0x1a3   : > { %v534_v36 = vmul.f32 %v917_v32, %v498_v18 }
 0x1a4   : > { %v540_v37 = vpack.c.bf16 %v536_v34, %v535_v33 }
 0x1a5   : > { %v539_v38 = vpack.c.bf16 %v534_v36, %v533_v35 }
 0x1a7   : > { %767 = vmatpush3.bf16.msra.mxu1 %v539_v38 }
 0x1a8   : > { %768 = vmatprep.subr.bf16.mxu1 %v1025_v4 }
 0x1ab   : > { %769 = vmatpush3.bf16.msra.mxu1 %v540_v37 }
 0x1ae   : > { %771 = vmatmul.mubr.msk.bf16.vlgmr.msra.gmra.mrb[0].mxu1 %vm558_vm14, %v901_v39 }
 0x281   : > { %v596_v40 = vpop.f32.mrb[0].mxu1 }
 0x282   : > { %v772_v41 = vpop.f32.mrb[1].mxu1  ;;  %v597_v54 = vadd.f32 %v596_v40, %v546_v53 }
 0x283   : > { %v599_v43 = vpop.f32.mrb[2].mxu1 }
 0x284   : > { %v600_v44 = vadd.f32 %v599_v43, %v551_v42  ;;  %v773_v45 = vpop.f32.mrb[3].mxu1 }
 0x286   : > { %v603_v46 = vmax.f32 %v600_v44, -30.0 }
 0x288   : > { %v604_v47 = vmin.f32 %v603_v46, 20.0 }
 0x28a   : > { %v605_v48 = vmul.f32 0.5, %v604_v47 }
 0x28c   : > { %v606_v49 = vmul.f32 1.442695, %v605_v48 }
 0x28e   : > { %918 = vpow2.f32 %v606_v49 }
 0x298   : > { %v919_v52 = vpop.eup %918 }
 0x299   : > { %v610_v55 = vmul.f32 %v919_v52, %v609_v51 }
 0x29b   : > { %v611_v56 = vadd.f32 %v610_v55, %v597_v54 }
 0x29d   : > { %612 = vst [vmem:[%s291_s18] sm:$0xf] %v611_v56 }
 0x29e   : > { %933 = shalt.err (!%p930_p9)
}
 0x29f   : > { %s934_s30 = scalar_lea.hbm %s1218_s20, 64  ;;  %s938_s18 = scalar_lea.hbm %s1277_s6, 256 }
 0x2a0   : > { %p935_p10 = scmp.ne.s32.totalorder %s1218_s20, %s934_s30  ;;  %p939_p13 = scmp.lt.u32.totalorder %s1218_s20, %s1277_s6 }
 0x2a1   : > { %p940_p0 = scmp.lt.u32.totalorder %s938_s18, %s934_s30  ;;  %p942_p2 = scmp.lt.u32.totalorder %s934_s30, %s1218_s20 }
 0x2a2   : > { %p936_p11 = pnand %p935_p10, %p1114_p3 }
 0x2a3   : > { %p941_p1 = por %p940_p0, %p939_p13 }
 0x2a4   : > { %p937_p12 = pneg %p936_p11 }
 0x2a5   : > { %p943_p4 = por %p942_p2, %p941_p1 }
 0x2a7   : > { %p944_p5 = pnand %p943_p4, %p937_p12 }
 0x2a9   : > { %947 = shalt.err (!%p944_p5)
}
 0x2aa   : > { %775 = dma.vmem_to_hbm [thread:$0]  (%p1114_p3), %s1220_s25, 64, %s1218_s20, %s614_s29  }
 0x2ab PF: > { %p781_p6 = scmp.ge.s32.totalorder %s1014_s28, 2  ;;  %s641_s9 = sand.u32 1, %s986_s21  }
 0x2ac   : > { %s642_s17 = scalar_lea.sflag [#allocation3], %s641_s9 }
 0x2ad   : > { %p778_p7 = pnand %p781_p6, %p1123_p8 }
 0x2af   : > { %981 = dma.done.wait (!%p778_p7), %s642_s17, 64  }
 0x2b0   : > { %983 = vsyncadd (!%p778_p7), %s642_s17, 4294967232  ;;  %s19_s28 = sadd.s32 1, %s1014_s28   ;;  %s1284_s21 = smov %s990_s22 }
 0x2b1   : > { %p16_p9 = scmp.ge.s32.totalorder %s19_s28, 6   ;;  %s1285_s22 = smov %s994_s23 }
 0x2b2   : > { %s1286_s23 = smov %s1132_s15  ;;  %s1287_s24 = smov %s1006_s26 }
 0x2b3   : > { %s1288_s25 = smov %s1010_s27  ;;  %s1289_s26 = smov %s1292_s7 }
 0x2b4   : > { %s1290_s27 = smov %s1296_s8  ;;  %18 = sbr.rel (!%p16_p9) target bundleno = 5 (0x5), region = 82 }
 0x2bb   :  { %647 = vsyncpa [#allocation3], 1 }
 0x2bc   :  { %649 = vsyncpa [#allocation3 + $0x1], 1 }

</bundles_post_ra>
